<compile_context>
chip_gen: v5e
topology: v5e:2x2
jax: 0.10.0
libtpu: 0.0.40
codegen_flags: <defaults>
</compile_context>

<pallas_src>
import functools

import jax
import jax.numpy as jnp
from jax.experimental import pallas as pl
from jax.experimental.pallas import tpu as pltpu


def _round_up(x, m):
    return ((x + m - 1) // m) * m


def _make_critic_kernel(use_bf16_matmul):
    mm_dtype = jnp.bfloat16 if use_bf16_matmul else jnp.float32

    def kernel(state_ref, action_ref, w1s_ref, w1a_ref, b1_ref,
               w2_ref, b2_ref, w3_ref, b3_ref, q_ref):
        s = state_ref[...].astype(mm_dtype)                          # [TB, Ds]
        a = action_ref[...].astype(mm_dtype)                         # [TB, Da]

        # fc1 over the (virtually) concatenated input, split into two matmuls.
        h1 = (jnp.dot(s, w1s_ref[...].astype(mm_dtype),
                      preferred_element_type=jnp.float32)
              + jnp.dot(a, w1a_ref[...].astype(mm_dtype),
                        preferred_element_type=jnp.float32)
              + b1_ref[...])                                         # [TB, H] f32
        h1 = jnp.maximum(h1, 0.0)                                    # relu (f32 VPU)

        # fc2: the 256x256 matmul that dominates compute.
        h2 = jnp.dot(h1.astype(mm_dtype), w2_ref[...].astype(mm_dtype),
                     preferred_element_type=jnp.float32) + b2_ref[...]
        h2 = jnp.maximum(h2, 0.0)                                    # relu (f32 VPU)

        # q head (out_features == 1): VPU multiply + reduce instead of a width-1
        # MXU matmul; w3 is passed as a (1, H) row, b3 as an SMEM scalar.
        q = jnp.sum(h2 * w3_ref[...], axis=-1, keepdims=True) + b3_ref[0, 0]
        q_ref[...] = q.astype(q_ref.dtype)                           # [TB, 1]

    return kernel


@functools.partial(jax.jit, static_argnames=("tile_b", "use_bf16_matmul"))
def critic_forward(state, action, params, *, tile_b=None, use_bf16_matmul=False):
    """Pallas-backed forward pass of the SAC Critic module."""
    w1, b1, w2, b2, w3, b3 = params
    state = state.astype(jnp.float32)
    action = action.astype(jnp.float32)

    B, Ds = state.shape
    _, Da = action.shape
    H = w1.shape[1]                                                  # 256

    # Split fc1 weights once in the wrapper (avoids concatenating the activations).
    w1s = w1[:Ds]                                                    # [Ds, H]
    w1a = w1[Ds:]                                                    # [Da, H]
    w3_row = w3.reshape(1, H)                                        # [1, H]
    b3_s = b3.reshape(1, 1)                                          # SMEM scalar

    # Batch tile: large enough to amortize per-step overhead, f32 sublane multiple of 8.
    if tile_b is None:
        tile_b = 1024 if B > 1024 else _round_up(max(B, 1), 8)
    TB = _round_up(tile_b, 8)
    B_pad = _round_up(B, TB)
    if B_pad != B:
        pad = B_pad - B
        state = jnp.pad(state, ((0, pad), (0, 0)))
        action = jnp.pad(action, ((0, pad), (0, 0)))

    grid = (B_pad // TB,)
    batch_spec = lambda cols: pl.BlockSpec((TB, cols), lambda i: (i, 0))
    resident = lambda shp: pl.BlockSpec(shp, lambda i: (0, 0))

    D = Ds + Da
    cost = pl.CostEstimate(
        flops=2 * B_pad * (D * H + H * H + H),
        transcendentals=0,
        bytes_accessed=4 * (B_pad * (D + 1) + D * H + H * H + 3 * H + 1),
    )

    out = pl.pallas_call(
        _make_critic_kernel(use_bf16_matmul),
        out_shape=jax.ShapeDtypeStruct((B_pad, 1), jnp.float32),
        grid=grid,
        in_specs=[
            batch_spec(Ds),                                          # state tile
            batch_spec(Da),                                          # action tile
            resident((Ds, H)),                                       # w1[:Ds]
            resident((Da, H)),                                       # w1[Ds:]
            resident((1, H)),                                        # b1
            resident((H, H)),                                        # w2
            resident((1, H)),                                        # b2
            resident((1, H)),                                        # w3 row
            pl.BlockSpec(memory_space=pltpu.MemorySpace.SMEM),       # b3 scalar
        ],
        out_specs=batch_spec(1),
        compiler_params=pltpu.CompilerParams(
            dimension_semantics=("parallel",),                       # shard batch on v7x
        ),
        cost_estimate=cost,
    )(state, action, w1s, w1a, b1, w2, b2, w3_row, b3_s)

    return out[:B]


def init_critic_params(key, input_dim, output_dim, hidden=256):
    """Deterministic synthetic parameters (shapes match the nn.Linear layers)."""
    d = input_dim + output_dim
    k1, k2, k3, k4, k5, k6 = jax.random.split(key, 6)
    # Stored as [in, out]; PyTorch stores [out, in] but y = x @ W.T + b is equivalent.
    w1 = jax.random.uniform(k1, (d, hidden), jnp.float32, -1.0, 1.0) / jnp.sqrt(d)
    b1 = jax.random.uniform(k2, (1, hidden), jnp.float32, -1.0, 1.0) / jnp.sqrt(d)
    w2 = jax.random.uniform(k3, (hidden, hidden), jnp.float32, -1.0, 1.0) / jnp.sqrt(hidden)
    b2 = jax.random.uniform(k4, (1, hidden), jnp.float32, -1.0, 1.0) / jnp.sqrt(hidden)
    w3 = jax.random.uniform(k5, (hidden, 1), jnp.float32, -1.0, 1.0) / jnp.sqrt(hidden)
    b3 = jax.random.uniform(k6, (1, 1), jnp.float32, -1.0, 1.0) / jnp.sqrt(hidden)
    return (w1, b1, w2, b2, w3, b3)


def critic_forward_ref(state, action, params):
    """Pure-JAX reference for correctness checking."""
    w1, b1, w2, b2, w3, b3 = params
    x = jnp.concatenate([state.astype(jnp.float32),
                         action.astype(jnp.float32)], axis=1)
    h1 = jnp.maximum(x @ w1 + b1, 0.0)
    h2 = jnp.maximum(h1 @ w2 + b2, 0.0)
    return h2 @ w3 + b3


if __name__ == "__main__":
    key = jax.random.PRNGKey(0)
    k_param, k_state, k_action, k_state2, k_action2 = jax.random.split(key, 5)

    input_dim = 8     # state dimension
    output_dim = 4    # action dimension
    params = init_critic_params(k_param, input_dim, output_dim)

    # Case 1: tiny batch (single tile, grid=(1,)).
    batch = 2
    state = jax.random.normal(k_state, (batch, input_dim), jnp.float32)
    action = jax.random.normal(k_action, (batch, output_dim), jnp.float32)
    q = jax.block_until_ready(critic_forward(state, action, params))
    q_ref = critic_forward_ref(state, action, params)
    assert q.shape == (batch, 1)
    assert jnp.allclose(q, q_ref, atol=1e-4, rtol=1e-4), (q, q_ref)

    # Case 2: ragged batch with multi-step grid (exercises padding + batch tiling).
    batch2 = 40
    state2 = jax.random.normal(k_state2, (batch2, input_dim), jnp.float32)
    action2 = jax.random.normal(k_action2, (batch2, output_dim), jnp.float32)
    q2 = jax.block_until_ready(critic_forward(state2, action2, params, tile_b=16))
    q2_ref = critic_forward_ref(state2, action2, params)
    assert q2.shape == (batch2, 1)
    assert jnp.allclose(q2, q2_ref, atol=1e-4, rtol=1e-4), (q2, q2_ref)

    print("KERNEL_OK")
</pallas_src>

<mosaic_0001>
module attributes {stable_mosaic.version = 11 : i64} {
  func.func @kernel(%arg0: i32, %arg1: memref<8x8xf32, #tpu.memory_space<vmem>>, %arg2: memref<8x4xf32, #tpu.memory_space<vmem>>, %arg3: memref<8x256xf32, #tpu.memory_space<vmem>>, %arg4: memref<4x256xf32, #tpu.memory_space<vmem>>, %arg5: memref<1x256xf32, #tpu.memory_space<vmem>>, %arg6: memref<256x256xf32, #tpu.memory_space<vmem>>, %arg7: memref<1x256xf32, #tpu.memory_space<vmem>>, %arg8: memref<1x256xf32, #tpu.memory_space<vmem>>, %arg9: memref<1x1xf32, #tpu.memory_space<smem>>, %arg10: memref<8x1xf32, #tpu.memory_space<vmem>>) attributes {dimension_semantics = [#tpu.dimension_semantics<parallel>], iteration_bounds = array<i64: 1>, scalar_prefetch = 0 : i64, scratch_operands = 0 : i64, tpu.core_type = #tpu.core_type<tc>, window_params = [{transform_indices = @transform_0, window_bounds = array<i64: 8, 8>}, {transform_indices = @transform_1, window_bounds = array<i64: 8, 4>}, {pipeline_mode = #tpu.pipeline_mode<synchronous>, transform_indices = @transform_2, window_bounds = array<i64: 8, 256>}, {pipeline_mode = #tpu.pipeline_mode<synchronous>, transform_indices = @transform_3, window_bounds = array<i64: 4, 256>}, {pipeline_mode = #tpu.pipeline_mode<synchronous>, transform_indices = @transform_4, window_bounds = array<i64: 1, 256>}, {pipeline_mode = #tpu.pipeline_mode<synchronous>, transform_indices = @transform_5, window_bounds = array<i64: 256, 256>}, {pipeline_mode = #tpu.pipeline_mode<synchronous>, transform_indices = @transform_6, window_bounds = array<i64: 1, 256>}, {pipeline_mode = #tpu.pipeline_mode<synchronous>, transform_indices = @transform_7, window_bounds = array<i64: 1, 256>}, {transform_indices = @transform_8, window_bounds = array<i64: 1, 1>}, {transform_indices = @transform_9, window_bounds = array<i64: 8, 1>}]} {
    %c0 = arith.constant 0 : index
    %c0_0 = arith.constant 0 : index
    %0 = vector.load %arg1[%c0, %c0_0] : memref<8x8xf32, #tpu.memory_space<vmem>>, vector<8x8xf32>
    %c0_1 = arith.constant 0 : index
    %c0_2 = arith.constant 0 : index
    %1 = vector.load %arg2[%c0_1, %c0_2] : memref<8x4xf32, #tpu.memory_space<vmem>>, vector<8x4xf32>
    %c0_3 = arith.constant 0 : index
    %c0_4 = arith.constant 0 : index
    %2 = vector.load %arg3[%c0_3, %c0_4] : memref<8x256xf32, #tpu.memory_space<vmem>>, vector<8x256xf32>
    %cst = arith.constant dense<0.000000e+00> : vector<8x256xf32>
    %3 = tpu.matmul %0, %2, %cst {dimension_numbers = #tpu.dot_dimension_numbers<[1], [0], [0], [1], [0, 0, 1, 1], [], []>} : vector<8x8xf32>, vector<8x256xf32>, vector<8x256xf32> -> vector<8x256xf32>
    %c0_5 = arith.constant 0 : index
    %c0_6 = arith.constant 0 : index
    %4 = vector.load %arg4[%c0_5, %c0_6] : memref<4x256xf32, #tpu.memory_space<vmem>>, vector<4x256xf32>
    %cst_7 = arith.constant dense<0.000000e+00> : vector<8x256xf32>
    %5 = tpu.matmul %1, %4, %cst_7 {dimension_numbers = #tpu.dot_dimension_numbers<[1], [0], [0], [1], [0, 0, 1, 1], [], []>} : vector<8x4xf32>, vector<4x256xf32>, vector<8x256xf32> -> vector<8x256xf32>
    %6 = arith.addf %3, %5 : vector<8x256xf32>
    %c0_8 = arith.constant 0 : index
    %c0_9 = arith.constant 0 : index
    %7 = vector.load %arg5[%c0_8, %c0_9] : memref<1x256xf32, #tpu.memory_space<vmem>>, vector<1x256xf32>
    %8 = vector.broadcast %7 : vector<1x256xf32> to vector<8x256xf32>
    %9 = arith.addf %6, %8 : vector<8x256xf32>
    %cst_10 = arith.constant 0.000000e+00 : f32
    %10 = vector.broadcast %cst_10 : f32 to vector<8x256xf32>
    %11 = arith.maximumf %9, %10 : vector<8x256xf32>
    %c0_11 = arith.constant 0 : index
    %c0_12 = arith.constant 0 : index
    %12 = vector.load %arg6[%c0_11, %c0_12] : memref<256x256xf32, #tpu.memory_space<vmem>>, vector<256x256xf32>
    %cst_13 = arith.constant dense<0.000000e+00> : vector<8x256xf32>
    %13 = tpu.matmul %11, %12, %cst_13 {dimension_numbers = #tpu.dot_dimension_numbers<[1], [0], [0], [1], [0, 0, 1, 1], [], []>} : vector<8x256xf32>, vector<256x256xf32>, vector<8x256xf32> -> vector<8x256xf32>
    %c0_14 = arith.constant 0 : index
    %c0_15 = arith.constant 0 : index
    %14 = vector.load %arg7[%c0_14, %c0_15] : memref<1x256xf32, #tpu.memory_space<vmem>>, vector<1x256xf32>
    %15 = vector.broadcast %14 : vector<1x256xf32> to vector<8x256xf32>
    %16 = arith.addf %13, %15 : vector<8x256xf32>
    %cst_16 = arith.constant 0.000000e+00 : f32
    %17 = vector.broadcast %cst_16 : f32 to vector<8x256xf32>
    %18 = arith.maximumf %16, %17 : vector<8x256xf32>
    %c0_17 = arith.constant 0 : index
    %c0_18 = arith.constant 0 : index
    %19 = vector.load %arg8[%c0_17, %c0_18] : memref<1x256xf32, #tpu.memory_space<vmem>>, vector<1x256xf32>
    %20 = vector.broadcast %19 : vector<1x256xf32> to vector<8x256xf32>
    %21 = arith.mulf %18, %20 : vector<8x256xf32>
    %cst_19 = arith.constant dense<0.000000e+00> : vector<8xf32>
    %22 = vector.multi_reduction <add>, %21, %cst_19 [1] : vector<8x256xf32> to vector<8xf32>
    %23 = vector.shape_cast %22 : vector<8xf32> to vector<8x1xf32>
    %c0_20 = arith.constant 0 : index
    %c0_21 = arith.constant 0 : index
    %24 = memref.load %arg9[%c0_20, %c0_21] : memref<1x1xf32, #tpu.memory_space<smem>>
    %25 = vector.broadcast %24 : f32 to vector<8x1xf32>
    %26 = arith.addf %23, %25 : vector<8x1xf32>
    %c0_22 = arith.constant 0 : index
    %c0_23 = arith.constant 0 : index
    %27 = vector.load %arg10[%c0_22, %c0_23] : memref<8x1xf32, #tpu.memory_space<vmem>>, vector<8x1xf32>
    tpu.vector_store %arg10[%c0_22, %c0_23], %26 {strides = array<i32>} : memref<8x1xf32, #tpu.memory_space<vmem>>, vector<8x1xf32>,
    return
  }
  func.func @transform_0(%arg0: i32) -> (i32, i32) {
    %c0_i32 = arith.constant 0 : i32
    %c0_i32_0 = arith.constant 0 : i32
    return %arg0, %c0_i32 : i32, i32
  }
  func.func @transform_1(%arg0: i32) -> (i32, i32) {
    %c0_i32 = arith.constant 0 : i32
    %c0_i32_0 = arith.constant 0 : i32
    return %arg0, %c0_i32 : i32, i32
  }
  func.func @transform_2(%arg0: i32) -> (i32, i32) {
    %c0_i32 = arith.constant 0 : i32
    %c0_i32_0 = arith.constant 0 : i32
    %c0_i32_1 = arith.constant 0 : i32
    return %c0_i32, %c0_i32_0 : i32, i32
  }
  func.func @transform_3(%arg0: i32) -> (i32, i32) {
    %c0_i32 = arith.constant 0 : i32
    %c0_i32_0 = arith.constant 0 : i32
    %c0_i32_1 = arith.constant 0 : i32
    return %c0_i32, %c0_i32_0 : i32, i32
  }
  func.func @transform_4(%arg0: i32) -> (i32, i32) {
    %c0_i32 = arith.constant 0 : i32
    %c0_i32_0 = arith.constant 0 : i32
    %c0_i32_1 = arith.constant 0 : i32
    return %c0_i32, %c0_i32_0 : i32, i32
  }
  func.func @transform_5(%arg0: i32) -> (i32, i32) {
    %c0_i32 = arith.constant 0 : i32
    %c0_i32_0 = arith.constant 0 : i32
    %c0_i32_1 = arith.constant 0 : i32
    return %c0_i32, %c0_i32_0 : i32, i32
  }
  func.func @transform_6(%arg0: i32) -> (i32, i32) {
    %c0_i32 = arith.constant 0 : i32
    %c0_i32_0 = arith.constant 0 : i32
    %c0_i32_1 = arith.constant 0 : i32
    return %c0_i32, %c0_i32_0 : i32, i32
  }
  func.func @transform_7(%arg0: i32) -> (i32, i32) {
    %c0_i32 = arith.constant 0 : i32
    %c0_i32_0 = arith.constant 0 : i32
    %c0_i32_1 = arith.constant 0 : i32
    return %c0_i32, %c0_i32_0 : i32, i32
  }
  func.func @transform_8(%arg0: i32) -> (i32, i32) {
    %c0_i32 = arith.constant 0 : i32
    %c0_i32_0 = arith.constant 0 : i32
    %c0_i32_1 = arith.constant 0 : i32
    return %c0_i32, %c0_i32_0 : i32, i32
  }
  func.func @transform_9(%arg0: i32) -> (i32, i32) {
    %c0_i32 = arith.constant 0 : i32
    %c0_i32_0 = arith.constant 0 : i32
    return %arg0, %c0_i32 : i32, i32
  }
}

</mosaic_0001>

<bundles_post_ra>
// kernel: critic_forward.1
= control target key start
LH: loop header
LB: loop body
LE: loop exit
PB: predicated region body
PF: predicated region fallthrough
CT: control target
= control target key end

     0   :  { %15 = vsyncpa [#allocation4], 0  ;;  %s369_s12 = smov [#allocation3]   ;;  %s370_s14 = smov 256   ;;  %s455_s0 = inlined_call_operand.vmem [shape: f32[8,8], index: 0, kind: input, shape index: {}]   ;;  %s456_s1 = inlined_call_operand.vmem [shape: f32[8,4], index: 1, kind: input, shape index: {}]   ;;  %s457_s2 = inlined_call_operand.vmem [shape: f32[8,256], index: 2, kind: input, shape index: {}]   ;;  %s458_s3 = inlined_call_operand.vmem [shape: f32[4,256], index: 3, kind: input, shape index: {}]   ;;  %s459_s4 = inlined_call_operand.vmem [shape: f32[1,256], index: 4, kind: input, shape index: {}]   ;;  %s460_s5 = inlined_call_operand.hbm [shape: f32[256,256], index: 5, kind: input, shape index: {}]   ;;  %s461_s6 = inlined_call_operand.vmem [shape: f32[1,256], index: 6, kind: input, shape index: {}]   ;;  %s462_s7 = inlined_call_operand.vmem [shape: f32[1,256], index: 7, kind: input, shape index: {}]   ;;  %s463_s8 = inlined_call_operand.<no memory space> [shape: f32[1,1], index: 8, kind: input, shape index: {}]   ;;  %s464_s9 = inlined_call_operand.vmem [shape: f32[8,1], index: 9, kind: output, shape index: {}]  }
   0x1   :  { %s30_s11 = sshll.u32 %s460_s5, 4  ;;  %s32_s13 = sshll.u32 %s369_s12, 4  ;;  %s31_s11 = int_to_ptr.hbm [resolvable:$true] %s30_s11  ;;  %s33_s13 = int_to_ptr.vmem [resolvable:$true] %s32_s13 }
   0x2   :  { %s371_s15 = smov 16  }
   0x3   :  { %38 = dma.hbm_to_vmem [thread:$0]  %s31_s11, 8192, %s33_s13, [#allocation4], %s370_s14, %s370_s14, %s371_s15  }
   0x4   :  { %367 = dma.done.wait [#allocation4], 8192  }
   0x5   :  { %368 = vsyncadd [#allocation4], 4294959104  ;;  %vm107_vm0 = vcmask 64512   ;;  %v51_v0 = vld [vmem:[%s457_s2] sm:$0xff]  ;;  %v52_v2 = vld [vmem:[%s457_s2 + $0x8] sm:$0xff]  ;;  %vm62_vm1 = vcmask 1043456  }
   0x6   :  { %v49_v1 = vld [vmem:[%s455_s0] sm:$0xff]  ;;  %126 = vmatpush.msra.mxu2 %v51_v0  ;;  %146 = vmatpush.msra.mxu3 %v52_v2  ;;  %v190_v5 = vld [vmem:[#allocation3 + $0xe8] sm:$0xff]  ;;  %vm58_vm2 = vcmask 31744   ;;  %v191_v12 = vld [vmem:[#allocation3 + $0xf0] sm:$0xff]  ;;  %vm327_vm3 = vcmask 7168  }
   0x7   :  { %v53_v3 = vld [vmem:[%s458_s3] sm:$0xff]  ;;  %338 = vmatmul.msk.f32.vlgmr.msra.gmra.mxu2 %vm107_vm0, %v49_v1  ;;  %339 = vmatmul.msk.f32.vlgmr.msra.gmra.mxu3 %vm107_vm0, %v49_v1  ;;  %v222_v8 = vld [vmem:[#allocation3 + $0x1e8] sm:$0xff]  ;;  %v223_v13 = vld [vmem:[#allocation3 + $0x1f0] sm:$0xff] }
   0x8   :  { %55 = vst [vmem:[#allocation1] ss:$2 sm:$0xff] %v53_v3  ;;  %v192_v4 = vld [vmem:[#allocation3 + $0xf8] sm:$0xff]  ;;  %v186_v9 = vld [vmem:[#allocation3 + $0xc8] sm:$0xff]  ;;  %v189_v18 = vld [vmem:[#allocation3 + $0xe0] sm:$0xff] }
   0x9   :  { %271 = vmatpush.msrb.mxu2 %v192_v4  ;;  %v224_v6 = vld [vmem:[#allocation3 + $0x1f8] sm:$0xff]  ;;  %v218_v17 = vld [vmem:[#allocation3 + $0x1c8] sm:$0xff]  ;;  %v221_v19 = vld [vmem:[#allocation3 + $0x1e0] sm:$0xff] }
   0xa   :  { %291 = vmatpush.msrb.mxu3 %v224_v6  ;;  %v188_v7 = vld [vmem:[#allocation3 + $0xd8] sm:$0xff]  ;;  %v182_v20 = vld [vmem:[#allocation3 + $0xa8] sm:$0xff]  ;;  %v187_v22 = vld [vmem:[#allocation3 + $0xd0] sm:$0xff] }
   0xb   :  { %272 = vmatpush.msrb.mxu2 %v190_v5  ;;  %v220_v10 = vld [vmem:[#allocation3 + $0x1d8] sm:$0xff]  ;;  %v219_v23 = vld [vmem:[#allocation3 + $0x1d0] sm:$0xff]  ;;  %v214_v25 = vld [vmem:[#allocation3 + $0x1a8] sm:$0xff] }
   0xc   :  { %292 = vmatpush.msrb.mxu3 %v222_v8  ;;  %v50_v11 = vld [vmem:[%s456_s1] sm:$0xff]  ;;  %v185_v26 = vld [vmem:[#allocation3 + $0xc0] sm:$0xff]  ;;  %v178_v28 = vld [vmem:[#allocation3 + $0x88] sm:$0xff] }
   0xd   :  { %273 = vmatpush.msrb.mxu2 %v188_v7  ;;  %v184_v16 = vld [vmem:[#allocation3 + $0xb8] sm:$0xff]  ;;  %v217_v27 = vld [vmem:[#allocation3 + $0x1c0] sm:$0xff]  ;;  %v183_v30 = vld [vmem:[#allocation3 + $0xb0] sm:$0xff] }
   0xe   :  { %293 = vmatpush.msrb.mxu3 %v220_v10  ;;  %v216_v21 = vld [vmem:[#allocation3 + $0x1b8] sm:$0xff]  ;;  %v215_v31 = vld [vmem:[#allocation3 + $0x1b0] sm:$0xff]  ;;  %v210_v33 = vld [vmem:[#allocation3 + $0x188] sm:$0xff] }
   0xf   :  { %v56_v14 = vld.sshfl [vmem:[#allocation1] sm:$0xff pattern:$0x75316420]  ;;  %v57_v15 = vld.sshfl [vmem:[#allocation1 + $0x8] sm:$0xff pattern:$0x75316420]  ;;  %274 = vmatpush.msrb.mxu2 %v186_v9 }
  0x10   :  { %334 = vmatpush.msk.msra.mxu0 %vm62_vm1, %v56_v14  ;;  %336 = vmatpush.msk.msra.mxu1 %vm62_vm1, %v57_v15  ;;  %v180_v24 = vld [vmem:[#allocation3 + $0x98] sm:$0xff]  ;;  %v181_v34 = vld [vmem:[#allocation3 + $0xa0] sm:$0xff]  ;;  %v174_v36 = vld [vmem:[#allocation3 + $0x68] sm:$0xff] }
  0x11   :  { %335 = vmatmul.msk.f32.vlgmr.msra.gmra.mxu0 %vm58_vm2, %v50_v11  ;;  %337 = vmatmul.msk.f32.vlgmr.msra.gmra.mxu1 %vm58_vm2, %v50_v11  ;;  %v212_v29 = vld [vmem:[#allocation3 + $0x198] sm:$0xff]  ;;  %v213_v35 = vld [vmem:[#allocation3 + $0x1a0] sm:$0xff]  ;;  %v179_v38 = vld [vmem:[#allocation3 + $0x90] sm:$0xff] }
  0x12   :  { %231 = vmatpush.msrb.mxu0 %v191_v12  ;;  %251 = vmatpush.msrb.mxu1 %v223_v13  ;;  %v176_v32 = vld [vmem:[#allocation3 + $0x78] sm:$0xff]  ;;  %v211_v39 = vld [vmem:[#allocation3 + $0x190] sm:$0xff]  ;;  %v206_v41 = vld [vmem:[#allocation3 + $0x168] sm:$0xff] }
  0x13   :  { %275 = vmatpush.msrb.mxu2 %v184_v16  ;;  %294 = vmatpush.msrb.mxu3 %v218_v17  ;;  %v208_v37 = vld [vmem:[#allocation3 + $0x178] sm:$0xff]  ;;  %v177_v42 = vld [vmem:[#allocation3 + $0x80] sm:$0xff]  ;;  %v170_v44 = vld [vmem:[#allocation3 + $0x48] sm:$0xff] }
  0x14   :  { %232 = vmatpush.msrb.mxu0 %v189_v18  ;;  %252 = vmatpush.msrb.mxu1 %v221_v19  ;;  %v172_v40 = vld [vmem:[#allocation3 + $0x58] sm:$0xff]  ;;  %v209_v43 = vld [vmem:[#allocation3 + $0x180] sm:$0xff]  ;;  %v175_v46 = vld [vmem:[#allocation3 + $0x70] sm:$0xff] }
  0x15   :  { %276 = vmatpush.msrb.mxu2 %v182_v20  ;;  %295 = vmatpush.msrb.mxu3 %v216_v21  ;;  %v204_v45 = vld [vmem:[#allocation3 + $0x158] sm:$0xff]  ;;  %v207_v47 = vld [vmem:[#allocation3 + $0x170] sm:$0xff]  ;;  %v173_v48 = vld [vmem:[#allocation3 + $0x60] sm:$0xff] }
  0x16   :  { %233 = vmatpush.msrb.mxu0 %v187_v22  ;;  %253 = vmatpush.msrb.mxu1 %v219_v23  ;;  %v205_v49 = vld [vmem:[#allocation3 + $0x160] sm:$0xff]  ;;  %v171_v50 = vld [vmem:[#allocation3 + $0x50] sm:$0xff]  ;;  %v168_v55 = vld [vmem:[#allocation3 + $0x38] sm:$0xff] }
  0x17   :  { %277 = vmatpush.msrb.mxu2 %v180_v24  ;;  %296 = vmatpush.msrb.mxu3 %v214_v25  ;;  %v203_v51 = vld [vmem:[#allocation3 + $0x150] sm:$0xff]  ;;  %v169_v52 = vld [vmem:[#allocation3 + $0x40] sm:$0xff]  ;;  %v202_v56 = vld [vmem:[#allocation3 + $0x148] sm:$0xff] }
  0x18   :  { %234 = vmatpush.msrb.mxu0 %v185_v26  ;;  %254 = vmatpush.msrb.mxu1 %v217_v27  ;;  %v167_v53 = vld [vmem:[#allocation3 + $0x30] sm:$0xff]  ;;  %v201_v54 = vld [vmem:[#allocation3 + $0x140] sm:$0xff]  ;;  %v166_v59 = vld [vmem:[#allocation3 + $0x28] sm:$0xff] }
  0x19   :  { %278 = vmatpush.msrb.mxu2 %v178_v28  ;;  %297 = vmatpush.msrb.mxu3 %v212_v29  ;;  %v165_v57 = vld [vmem:[#allocation3 + $0x20] sm:$0xff]  ;;  %v199_v58 = vld [vmem:[#allocation3 + $0x130] sm:$0xff]  ;;  %v200_v60 = vld [vmem:[#allocation3 + $0x138] sm:$0xff] }
  0x1a   :  { %235 = vmatpush.msrb.mxu0 %v183_v30  ;;  %255 = vmatpush.msrb.mxu1 %v215_v31  ;;  %v163_v61 = vld [vmem:[#allocation3 + $0x10] sm:$0xff]  ;;  %v197_v62 = vld [vmem:[#allocation3 + $0x120] sm:$0xff]  ;;  %v164_v63 = vld [vmem:[#allocation3 + $0x18] sm:$0xff] }
  0x1b   :  { %279 = vmatpush.msrb.mxu2 %v176_v32  ;;  %298 = vmatpush.msrb.mxu3 %v210_v33  ;;  %v198_v0 = vld [vmem:[#allocation3 + $0x128] sm:$0xff]  ;;  %v161_v1 = vld [vmem:[#allocation3] sm:$0xff]  ;;  %v195_v2 = vld [vmem:[#allocation3 + $0x110] sm:$0xff] }
  0x1c   :  { %236 = vmatpush.msrb.mxu0 %v181_v34  ;;  %256 = vmatpush.msrb.mxu1 %v213_v35  ;;  %v162_v3 = vld [vmem:[#allocation3 + $0x8] sm:$0xff]  ;;  %v196_v4 = vld [vmem:[#allocation3 + $0x118] sm:$0xff]  ;;  %v193_v5 = vld [vmem:[#allocation3 + $0x100] sm:$0xff] }
  0x1d   :  { %280 = vmatpush.msrb.mxu2 %v174_v36  ;;  %299 = vmatpush.msrb.mxu3 %v208_v37  ;;  %v194_v6 = vld [vmem:[#allocation3 + $0x108] sm:$0xff]  ;;  %v151_v7 = vld [vmem:[%s459_s4] sm:$0x3] }
  0x1e   :  { %237 = vmatpush.msrb.mxu0 %v179_v38  ;;  %257 = vmatpush.msrb.mxu1 %v211_v39  ;;  %v153_v10 = vperm.slane %v151_v7, 0  ;;  %v154_v11 = vperm.slane %v151_v7, 1  ;;  %v225_v20 = vld [vmem:[%s461_s6] sm:$0x3]  ;;  %v325_v39 = vstv %s463_s8 }
  0x1f   :  { %281 = vmatpush.msrb.mxu2 %v172_v40  ;;  %300 = vmatpush.msrb.mxu3 %v206_v41  ;;  %v227_v21 = vperm.slane %v225_v20, 0  ;;  %v228_v25 = vperm.slane %v225_v20, 1  ;;  %v313_v28 = vld [vmem:[%s462_s7] sm:$0x3] }
  0x20   :  { %238 = vmatpush.msrb.mxu0 %v177_v42  ;;  %258 = vmatpush.msrb.mxu1 %v209_v43  ;;  %v315_v33 = vperm.slane %v313_v28, 0  ;;  %v316_v34 = vperm.slane %v313_v28, 1 }
  0x21   :  { %282 = vmatpush.msrb.mxu2 %v170_v44  ;;  %301 = vmatpush.msrb.mxu3 %v204_v45 }
  0x22   :  { %239 = vmatpush.msrb.mxu0 %v175_v46  ;;  %259 = vmatpush.msrb.mxu1 %v207_v47 }
  0x23   :  { %283 = vmatpush.msrb.mxu2 %v168_v55  ;;  %302 = vmatpush.msrb.mxu3 %v202_v56 }
  0x24   :  { %240 = vmatpush.msrb.mxu0 %v173_v48  ;;  %260 = vmatpush.msrb.mxu1 %v205_v49 }
  0x25   :  { %284 = vmatpush.msrb.mxu2 %v166_v59  ;;  %303 = vmatpush.msrb.mxu3 %v200_v60 }
  0x26   :  { %241 = vmatpush.msrb.mxu0 %v171_v50  ;;  %261 = vmatpush.msrb.mxu1 %v203_v51 }
  0x27   :  { %285 = vmatpush.msrb.mxu2 %v164_v63  ;;  %304 = vmatpush.msrb.mxu3 %v198_v0 }
  0x28   :  { %242 = vmatpush.msrb.mxu0 %v169_v52  ;;  %262 = vmatpush.msrb.mxu1 %v201_v54 }
  0x29   :  { %286 = vmatpush.msrb.mxu2 %v162_v3  ;;  %305 = vmatpush.msrb.mxu3 %v196_v4 }
  0x2a   :  { %243 = vmatpush.msrb.mxu0 %v167_v53  ;;  %263 = vmatpush.msrb.mxu1 %v199_v58 }
  0x2b   :  { %306 = vmatpush.msrb.mxu3 %v194_v6 }
  0x2c   :  { %244 = vmatpush.msrb.mxu0 %v165_v57  ;;  %264 = vmatpush.msrb.mxu1 %v197_v62 }
  0x2e   :  { %245 = vmatpush.msrb.mxu0 %v163_v61  ;;  %265 = vmatpush.msrb.mxu1 %v195_v2 }
  0x30   :  { %246 = vmatpush.msrb.mxu0 %v161_v1  ;;  %266 = vmatpush.msrb.mxu1 %v193_v5 }
  0x8a   :  { %v128_v8 = vpop.f32.mrf.mxu2  ;;  %v148_v9 = vpop.f32.mrf.mxu3 }
  0x8e   :  { %v84_v12 = vpop.f32.mrf.mxu0  ;;  %v104_v13 = vpop.f32.mrf.mxu1 }
  0x8f   :  { %v129_v14 = vadd.f32 %v128_v8, %v84_v12  ;;  %v149_v15 = vadd.f32 %v148_v9, %v104_v13 }
  0x91   :  { %v157_v16 = vadd.f32 %v153_v10, %v129_v14  ;;  %v158_v17 = vadd.f32 %v154_v11, %v149_v15 }
  0x93   :  { %v159_v18 = vmax.f32 %v157_v16, 0.0  ;;  %v160_v19 = vmax.f32 %v158_v17, 0.0 }
  0x95   :  { %247 = vmatmul.f32.vlgmr.msrb.gmra.mxu0 %v159_v18  ;;  %287 = vmatmul.f32.vlgmr.msrb.gmra.mxu2 %v159_v18 }
  0x96   :  { %267 = vmatmul.f32.vlgmr.msrb.gmra.mxu1 %v160_v19  ;;  %307 = vmatmul.f32.vlgmr.msrb.gmra.mxu3 %v160_v19 }
 0x112   :  { %v248_v22 = vpop.f32.mrf.mxu0 }
 0x113   :  { %v249_v23 = vadd.f32 %v248_v22, %v227_v21  ;;  %v268_v24 = vpop.f32.mrf.mxu1 }
 0x115   :  { %v269_v26 = vadd.f32 %v268_v24, %v249_v23 }
 0x117   :  { %v311_v31 = vmax.f32 %v269_v26, 0.0 }
 0x118   :  { %v288_v27 = vpop.f32.mrf.mxu2 }
 0x119   :  { %v289_v29 = vadd.f32 %v288_v27, %v228_v25  ;;  %v308_v30 = vpop.f32.mrf.mxu3  ;;  %v319_v36 = vmul.f32 %v315_v33, %v311_v31 }
 0x11b   :  { %v309_v32 = vadd.f32 %v308_v30, %v289_v29 }
 0x11d   :  { %v312_v35 = vmax.f32 %v309_v32, 0.0 }
 0x11f   :  { %v320_v37 = vmul.f32 %v316_v34, %v312_v35 }
 0x121   :  { %v321_v38 = vadd.f32 %v320_v37, %v319_v36 }
 0x123   :  { %322 = vadd.xlane.f32.xlu0 %v321_v38 }
 0x196   :  { %v323_v40 = vpop.xlane.xlu0 %322 }
 0x197   :  { %v326_v41 = vadd.f32 %v325_v39, %v323_v40 }
 0x199   :  { %328 = vst.msk [vmem:[%s464_s9] sm:$0xff] %vm327_vm3, %v326_v41 }
 0x19a   :  { %333 = vsyncpa [#allocation4], 1 }

</bundles_post_ra>
